<compile_context>
chip_gen: v7x
topology: tpu7x:2x2x1
jax: 0.10.0
libtpu: 0.0.40
codegen_flags: <defaults>
</compile_context>

<pallas_src>
import jax
import jax.numpy as jnp
from jax import lax
from jax.experimental import pallas as pl
from jax.experimental.pallas import tpu as pltpu

# CPNet default hyper-parameters (from __init__ defaults)
EPS = 1e-5            # self.eps
FACT = 2.0            # self.fact
REJECT_RATIO = 1.0    # self.reject_ratio
PD_EPS = 1e-6         # F.pairwise_distance default eps
# knn='soft', use_dst_pt=True, use_dst_desc=False, outlier_filter=True,
# pose_solver='svd'  -> this is the path implemented below.


def _make_cpnet_kernel(bf16_exp):
    """Build the kernel; `bf16_exp` statically selects bf16-vs-f32 exp (EUP)."""

    def kernel(pc_ref, out_ref, a_sc, b_sc):
        b_blk = pc_ref.shape[0]
        n = pc_ref.shape[2]
        inv_fact = 1.0 / FACT

        # Zero the whole output block once per grid step; per-element results
        # are stored into sub-slices below (no zero tiles / concats in the loop).
        out_ref[...] = jnp.zeros_like(out_ref)

        # Constant MXU-operand rows + K-padding rows (5..7), once per grid step.
        a_sc[4:5, :] = jnp.full((1, n), inv_fact, jnp.float32)
        a_sc[5:8, :] = jnp.zeros((3, n), jnp.float32)
        b_sc[3:4, :] = jnp.ones((1, n), jnp.float32)
        b_sc[5:8, :] = jnp.zeros((3, n), jnp.float32)

        def body(b, carry):
            pc = pc_ref[b]                          # (8, N): pc1 rows 0-3, pc2 rows 4-7
            pc1 = pc[0:4, :]                        # (4, N) homogeneous
            pc2 = pc[4:8, :]                        # (4, N)
            p1 = pc[0:3, :]                         # (3, N) spatial coords
            p2 = pc[4:7, :]

            # ---- spatial_distance: pairwise squared distances via one MXU matmul ----
            # d[i,j] = |p1_i|^2 - 2 p1_i.p2_j + |p2_j|^2 ; sq terms folded into the
            # K=8 contraction.  A-rows pre-scaled by 1/FACT so the reciprocal below
            # directly yields FACT / max(d, EPS).
            sq1 = jnp.sum(p1 * p1, axis=0, keepdims=True)        # (1, N)
            sq2 = jnp.sum(p2 * p2, axis=0, keepdims=True)        # (1, N)
            a_sc[0:3, :] = p1 * inv_fact
            a_sc[3:4, :] = sq1 * inv_fact
            b_sc[0:3, :] = -2.0 * p2
            b_sc[4:5, :] = sq2

            d_scaled = lax.dot_general(
                a_sc[...], b_sc[...], (((0,), (0,)), ((), ())),
                preferred_element_type=jnp.float32,
                precision=lax.Precision.HIGHEST)                 # (N, N) = d / FACT

            # ---- soft_knn (unnormalized softmax; denominator recovered from row 3) ----
            # logits = FACT / max(d, EPS) == 1 / max(d/FACT, EPS/FACT)
            logits = pl.reciprocal(jnp.maximum(d_scaled, EPS * inv_fact), approx=True)
            m = jnp.max(logits, axis=1, keepdims=True)           # (N, 1) row max
            s = logits - m
            if bf16_exp:
                e = jnp.exp(s.astype(jnp.bfloat16))              # bf16 EUP (v6e/v7x)
            else:
                e = jnp.exp(s).astype(jnp.bfloat16)              # f32 EUP, bf16 pack (v5e)

            # pc_unnorm[c, i] = sum_j pc2[c, j] * e[i, j]; pc2[3,:] == 1 so
            # pc_unnorm[3, :] is exactly the softmax row-sum.
            pc_unnorm = lax.dot_general(
                pc2.astype(jnp.bfloat16), e, (((1,), (1,)), ((), ())),
                preferred_element_type=jnp.float32)              # (4, N)
            inv_denom = 1.0 / pc_unnorm[3:4, :]                  # exact; only (1, N)
            pc_nearest = pc_unnorm * inv_denom                   # (4, N)

            # ---- mean knn distance + soft_outlier_rejection (shared diff) ----
            diff = pc1 - pc_nearest                              # (4, N), reused
            dist = jnp.sqrt(jnp.sum(diff * diff, axis=0, keepdims=True))      # (1, N)
            diffe = diff + PD_EPS                                # pairwise_distance eps
            pd = jnp.sqrt(jnp.sum(diffe * diffe, axis=0, keepdims=True))      # (1, N)
            err = jnp.mean(pd, axis=1, keepdims=True)                         # (1, 1)

            mean_dist = jnp.mean(dist, axis=1, keepdims=True)
            indexor = jnp.where(dist <= mean_dist * REJECT_RATIO + EPS, 1.0, 0.0)

            # ---- soft_tf (everything up to the SVD) ----
            p2n = pc_nearest[0:3, :]                                          # (3, N)
            inv_sum = 1.0 / jnp.sum(indexor, axis=1, keepdims=True)           # (1, 1)
            c2 = jnp.sum(p2n * indexor, axis=1, keepdims=True) * inv_sum      # (3, 1)
            c1 = jnp.sum(p1 * indexor, axis=1, keepdims=True) * inv_sum       # (3, 1)
            p2c = (p2n - c2) * indexor
            p1c = (p1 - c1) * indexor
            H = lax.dot_general(p1c, p2c, (((1,), (1,)), ((), ())),
                                preferred_element_type=jnp.float32,
                                precision=lax.Precision.HIGHEST)              # (3, 3)

            # ---- store into the lane-dense (8,128) slab for this batch element ----
            # lanes 0-2: H, lane 3: c1, lane 4: c2, lane 5 (row 0): err
            out_ref[b, 0:3, 0:3] = H
            out_ref[b, 0:3, 3:4] = c1
            out_ref[b, 0:3, 4:5] = c2
            out_ref[b, 0:1, 5:6] = err
            return carry

        if b_blk == 1:
            body(0, 0)                             # static index, no loop overhead
        else:
            # fori_loop bounds the NxN live ranges to one batch element.
            lax.fori_loop(0, b_blk, body, 0)

    return kernel


def _has_bf16_eup():
    """v6e / v7x EUP runs bf16 transcendentals; v2-v5 do not."""
    try:
        kind = jax.devices()[0].device_kind.lower()
    except Exception:
        return False
    return ("v6" in kind) or ("v7" in kind)


def _vmem_cap_bytes():
    """Generation-aware VMEM ceiling (0.85x physical), v7x-safe fallback."""
    try:
        info = pltpu.get_tpu_info()
        cap = getattr(info, "vmem_capacity_bytes", None)
        if cap:
            return int(0.85 * cap)
    except Exception:
        pass
    return 56 << 20   # safe for v7x's 64 MiB physical VMEM


def _pick_b_blk(B, N):
    """Unroll batch only at tiny N (amortize ~0.35us/step); keep grid >= 2."""
    target = max(1, 512 // max(N, 1))
    best = 1
    for c in range(1, B + 1):
        if B % c != 0 or c > target:
            continue
        if (B // c >= 2) or (B == 1):
            best = max(best, c)
    return best


def cpnet_pallas(pc1, pc2, b_blk=None):
    B, C, N = pc1.shape
    assert C == 4 and N % 128 == 0
    if b_blk is None:
        b_blk = _pick_b_blk(B, N)

    # Single sublane-dense input: pc1 rows 0-3, pc2 rows 4-7.
    pc = jnp.concatenate([pc1, pc2], axis=1)       # (B, 8, N)

    in_spec = pl.BlockSpec((b_blk, 8, N), lambda g: (g, 0, 0))
    out_spec = pl.BlockSpec((b_blk, 8, 128), lambda g: (g, 0, 0))

    # VMEM budget: one batch element's NxN set (d f32 + logits f32 + e bf16) is
    # live at a time (fori_loop), plus double-buffered I/O, scratch, headroom.
    nn_bytes = (4 + 4 + 2) * N * N
    io_bytes = 2 * (b_blk * 8 * N * 4) + 2 * (b_blk * 8 * 128 * 4)
    scratch_bytes = 2 * 8 * N * 4
    want = nn_bytes + io_bytes + scratch_bytes + (4 << 20)
    vmem_limit = int(min(max(want, 16 << 20), _vmem_cap_bytes()))

    kernel = _make_cpnet_kernel(_has_bf16_eup())

    return pl.pallas_call(
        kernel,
        out_shape=jax.ShapeDtypeStruct((B, 8, 128), jnp.float32),
        grid=(B // b_blk,),
        in_specs=[in_spec],
        out_specs=out_spec,
        scratch_shapes=[pltpu.VMEM((8, N), jnp.float32),
                        pltpu.VMEM((8, N), jnp.float32)],
        compiler_params=pltpu.CompilerParams(
            dimension_semantics=("parallel",),     # batch blocks are independent
            vmem_limit_bytes=vmem_limit),
    )(pc)


def _sign_pm(x):
    # +1 for x >= 0, -1 otherwise (avoids jnp.sign's 0-at-0 zeroing a quat component)
    return jnp.where(x >= 0.0, 1.0, -1.0)


def _rot_to_quat(R):
    # TODO(synk): utils.rot_to_quat source unavailable; standard [w, x, y, z] convention used.
    r00, r11, r22 = R[..., 0, 0], R[..., 1, 1], R[..., 2, 2]
    qw = 0.5 * jnp.sqrt(jnp.maximum(0.0, 1.0 + r00 + r11 + r22))
    qx = 0.5 * jnp.sqrt(jnp.maximum(0.0, 1.0 + r00 - r11 - r22))
    qy = 0.5 * jnp.sqrt(jnp.maximum(0.0, 1.0 - r00 + r11 - r22))
    qz = 0.5 * jnp.sqrt(jnp.maximum(0.0, 1.0 - r00 - r11 + r22))
    qx = qx * _sign_pm(R[..., 2, 1] - R[..., 1, 2])
    qy = qy * _sign_pm(R[..., 0, 2] - R[..., 2, 0])
    qz = qz * _sign_pm(R[..., 1, 0] - R[..., 0, 1])
    return jnp.stack([qw, qx, qy, qz], axis=-1)


def cpnet_forward(pc1, pc2):
    """Equivalent of CPNet.forward (soft knn, outlier filter, SVD solver)."""
    B = pc1.shape[0]
    packed = cpnet_pallas(pc1, pc2)            # (B, 8, 128) lane-dense slab

    H = packed[:, 0:3, 0:3]                    # (B, 3, 3) correlation matrix
    c1 = packed[:, 0:3, 3]                     # (B, 3) pc1 centroid
    c2 = packed[:, 0:3, 4]                     # (B, 3) pc2(nearest) centroid
    err = packed[:, 0:1, 5]                    # (B, 1) mean knn distance

    # SVD pose solver (3x3 per batch; plain JAX, matches torch.svd semantics)
    U, _S, Vt = jnp.linalg.svd(H)
    V = jnp.swapaxes(Vt, -1, -2)
    sign = jnp.where(jnp.linalg.det(U) * jnp.linalg.det(V) < 0.0, -1.0, 1.0)
    V = V.at[..., 2].multiply(sign[:, None])   # negate last column if reflection
    R = V @ jnp.swapaxes(U, -1, -2)

    t = c2 - jnp.einsum('bij,bj->bi', R, c1)

    T = jnp.zeros((B, 4, 4), jnp.float32)
    T = T.at[:, :3, :3].set(R).at[:, :3, 3].set(t).at[:, 3, 3].set(1.0)
    q = _rot_to_quat(R)
    return {'T': T, 'q': q, 'p': t, 'err': err}


if __name__ == "__main__":
    key = jax.random.PRNGKey(0)
    B, N = 2, 128
    k1, k2 = jax.random.split(key)

    pts1 = jax.random.normal(k1, (B, 3, N), dtype=jnp.float32)
    theta = 0.3
    Rz = jnp.array([[jnp.cos(theta), -jnp.sin(theta), 0.0],
                    [jnp.sin(theta),  jnp.cos(theta), 0.0],
                    [0.0,             0.0,            1.0]], dtype=jnp.float32)
    tvec = jnp.array([0.5, -0.2, 0.1], dtype=jnp.float32)
    pts2 = jnp.einsum('ij,bjn->bin', Rz, pts1) + tvec[None, :, None]
    pts2 = pts2 + 0.01 * jax.random.normal(k2, (B, 3, N), dtype=jnp.float32)

    ones = jnp.ones((B, 1, N), dtype=jnp.float32)
    pc1 = jnp.concatenate([pts1, ones], axis=1)   # homogeneous [B, 4, N]
    pc2 = jnp.concatenate([pts2, ones], axis=1)

    out = cpnet_forward(pc1, pc2)
    for v in out.values():
        jax.block_until_ready(v)
    print("KERNEL_OK")
</pallas_src>

<mosaic_0001>
module attributes {stable_mosaic.version = 11 : i64} {
  func.func @kernel(%arg0: i32, %arg1: memref<1x8x128xf32, #tpu.memory_space<vmem>>, %arg2: memref<1x8x128xf32, #tpu.memory_space<vmem>>, %arg3: memref<8x128xf32, #tpu.memory_space<vmem>>, %arg4: memref<8x128xf32, #tpu.memory_space<vmem>>) attributes {dimension_semantics = [#tpu.dimension_semantics<parallel>], iteration_bounds = array<i64: 2>, scalar_prefetch = 0 : i64, scratch_operands = 2 : i64, tpu.core_type = #tpu.core_type<tc>, window_params = [{transform_indices = @transform_0, window_bounds = array<i64: 1, 8, 128>}, {transform_indices = @transform_1, window_bounds = array<i64: 1, 8, 128>}]} {
    %cst = arith.constant 0.000000e+00 : f32
    %0 = vector.broadcast %cst : f32 to vector<1x8x128xf32>
    %c0 = arith.constant 0 : index
    %c0_0 = arith.constant 0 : index
    %c0_1 = arith.constant 0 : index
    %1 = vector.load %arg2[%c0, %c0_0, %c0_1] : memref<1x8x128xf32, #tpu.memory_space<vmem>>, vector<1x8x128xf32>
    tpu.vector_store %arg2[%c0, %c0_0, %c0_1], %0 {strides = array<i32>} : memref<1x8x128xf32, #tpu.memory_space<vmem>>, vector<1x8x128xf32>,
    %cst_2 = arith.constant 5.000000e-01 : f32
    %2 = vector.broadcast %cst_2 : f32 to vector<1x128xf32>
    %c4 = arith.constant 4 : index
    %c0_3 = arith.constant 0 : index
    %3 = vector.load %arg3[%c4, %c0_3] : memref<8x128xf32, #tpu.memory_space<vmem>>, vector<1x128xf32>
    tpu.vector_store %arg3[%c4, %c0_3], %2 {strides = array<i32>} : memref<8x128xf32, #tpu.memory_space<vmem>>, vector<1x128xf32>,
    %cst_4 = arith.constant 0.000000e+00 : f32
    %4 = vector.broadcast %cst_4 : f32 to vector<3x128xf32>
    %c5 = arith.constant 5 : index
    %c0_5 = arith.constant 0 : index
    %5 = vector.load %arg3[%c5, %c0_5] : memref<8x128xf32, #tpu.memory_space<vmem>>, vector<3x128xf32>
    tpu.vector_store %arg3[%c5, %c0_5], %4 {strides = array<i32>} : memref<8x128xf32, #tpu.memory_space<vmem>>, vector<3x128xf32>,
    %cst_6 = arith.constant 1.000000e+00 : f32
    %6 = vector.broadcast %cst_6 : f32 to vector<1x128xf32>
    %c3 = arith.constant 3 : index
    %c0_7 = arith.constant 0 : index
    %7 = vector.load %arg4[%c3, %c0_7] : memref<8x128xf32, #tpu.memory_space<vmem>>, vector<1x128xf32>
    tpu.vector_store %arg4[%c3, %c0_7], %6 {strides = array<i32>} : memref<8x128xf32, #tpu.memory_space<vmem>>, vector<1x128xf32>,
    %cst_8 = arith.constant 0.000000e+00 : f32
    %8 = vector.broadcast %cst_8 : f32 to vector<3x128xf32>
    %c5_9 = arith.constant 5 : index
    %c0_10 = arith.constant 0 : index
    %9 = vector.load %arg4[%c5_9, %c0_10] : memref<8x128xf32, #tpu.memory_space<vmem>>, vector<3x128xf32>
    tpu.vector_store %arg4[%c5_9, %c0_10], %8 {strides = array<i32>} : memref<8x128xf32, #tpu.memory_space<vmem>>, vector<3x128xf32>,
    %c0_11 = arith.constant 0 : index
    %c0_12 = arith.constant 0 : index
    %c0_13 = arith.constant 0 : index
    %10 = vector.load %arg1[%c0_11, %c0_12, %c0_13] : memref<1x8x128xf32, #tpu.memory_space<vmem>>, vector<1x8x128xf32>
    %11 = vector.shape_cast %10 : vector<1x8x128xf32> to vector<8x128xf32>
    %12 = vector.extract_strided_slice %11 {offsets = [0, 0], sizes = [4, 128], strides = [1, 1]} : vector<8x128xf32> to vector<4x128xf32>
    %13 = vector.extract_strided_slice %11 {offsets = [4, 0], sizes = [4, 128], strides = [1, 1]} : vector<8x128xf32> to vector<4x128xf32>
    %14 = vector.extract_strided_slice %11 {offsets = [0, 0], sizes = [3, 128], strides = [1, 1]} : vector<8x128xf32> to vector<3x128xf32>
    %15 = vector.extract_strided_slice %11 {offsets = [4, 0], sizes = [3, 128], strides = [1, 1]} : vector<8x128xf32> to vector<3x128xf32>
    %16 = arith.mulf %14, %14 : vector<3x128xf32>
    %cst_14 = arith.constant dense<0.000000e+00> : vector<128xf32>
    %17 = vector.multi_reduction <add>, %16, %cst_14 [0] : vector<3x128xf32> to vector<128xf32>
    %18 = vector.shape_cast %17 : vector<128xf32> to vector<1x128xf32>
    %19 = arith.mulf %15, %15 : vector<3x128xf32>
    %cst_15 = arith.constant dense<0.000000e+00> : vector<128xf32>
    %20 = vector.multi_reduction <add>, %19, %cst_15 [0] : vector<3x128xf32> to vector<128xf32>
    %21 = vector.shape_cast %20 : vector<128xf32> to vector<1x128xf32>
    %cst_16 = arith.constant 5.000000e-01 : f32
    %22 = vector.broadcast %cst_16 : f32 to vector<3x128xf32>
    %23 = arith.mulf %14, %22 : vector<3x128xf32>
    %c0_17 = arith.constant 0 : index
    %c0_18 = arith.constant 0 : index
    %24 = vector.load %arg3[%c0_17, %c0_18] : memref<8x128xf32, #tpu.memory_space<vmem>>, vector<3x128xf32>
    tpu.vector_store %arg3[%c0_17, %c0_18], %23 {strides = array<i32>} : memref<8x128xf32, #tpu.memory_space<vmem>>, vector<3x128xf32>,
    %cst_19 = arith.constant 5.000000e-01 : f32
    %25 = vector.broadcast %cst_19 : f32 to vector<1x128xf32>
    %26 = arith.mulf %18, %25 : vector<1x128xf32>
    %c3_20 = arith.constant 3 : index
    %c0_21 = arith.constant 0 : index
    %27 = vector.load %arg3[%c3_20, %c0_21] : memref<8x128xf32, #tpu.memory_space<vmem>>, vector<1x128xf32>
    tpu.vector_store %arg3[%c3_20, %c0_21], %26 {strides = array<i32>} : memref<8x128xf32, #tpu.memory_space<vmem>>, vector<1x128xf32>,
    %cst_22 = arith.constant -2.000000e+00 : f32
    %28 = vector.broadcast %cst_22 : f32 to vector<3x128xf32>
    %29 = arith.mulf %28, %15 : vector<3x128xf32>
    %c0_23 = arith.constant 0 : index
    %c0_24 = arith.constant 0 : index
    %30 = vector.load %arg4[%c0_23, %c0_24] : memref<8x128xf32, #tpu.memory_space<vmem>>, vector<3x128xf32>
    tpu.vector_store %arg4[%c0_23, %c0_24], %29 {strides = array<i32>} : memref<8x128xf32, #tpu.memory_space<vmem>>, vector<3x128xf32>,
    %c4_25 = arith.constant 4 : index
    %c0_26 = arith.constant 0 : index
    %31 = vector.load %arg4[%c4_25, %c0_26] : memref<8x128xf32, #tpu.memory_space<vmem>>, vector<1x128xf32>
    tpu.vector_store %arg4[%c4_25, %c0_26], %21 {strides = array<i32>} : memref<8x128xf32, #tpu.memory_space<vmem>>, vector<1x128xf32>,
    %c0_27 = arith.constant 0 : index
    %c0_28 = arith.constant 0 : index
    %32 = vector.load %arg3[%c0_27, %c0_28] : memref<8x128xf32, #tpu.memory_space<vmem>>, vector<8x128xf32>
    %c0_29 = arith.constant 0 : index
    %c0_30 = arith.constant 0 : index
    %33 = vector.load %arg4[%c0_29, %c0_30] : memref<8x128xf32, #tpu.memory_space<vmem>>, vector<8x128xf32>
    %cst_31 = arith.constant dense<0.000000e+00> : vector<128x128xf32>
    %34 = tpu.matmul %32, %33, %cst_31 {dimension_numbers = #tpu.dot_dimension_numbers<[0], [0], [1], [1], [0, 1, 1, 1], [], []>, precision = #tpu.contract_precision<fp32>} : vector<8x128xf32>, vector<8x128xf32>, vector<128x128xf32> -> vector<128x128xf32>
    %cst_32 = arith.constant 5.000000e-06 : f32
    %35 = vector.broadcast %cst_32 : f32 to vector<128x128xf32>
    %36 = arith.maximumf %34, %35 : vector<128x128xf32>
    %37 = tpu.reciprocal %36 {approx = true} : vector<128x128xf32> -> vector<128x128xf32>
    %cst_33 = arith.constant dense<0xFF800000> : vector<128xf32>
    %38 = vector.multi_reduction <maximumf>, %37, %cst_33 [1] : vector<128x128xf32> to vector<128xf32>
    %39 = vector.shape_cast %38 : vector<128xf32> to vector<128x1xf32>
    %40 = vector.broadcast %39 : vector<128x1xf32> to vector<128x128xf32>
    %41 = arith.subf %37, %40 : vector<128x128xf32>
    %42 = math.exp %41 : vector<128x128xf32>
    %43 = arith.truncf %42 : vector<128x128xf32> to vector<128x128xbf16>
    %44 = arith.truncf %13 : vector<4x128xf32> to vector<4x128xbf16>
    %cst_34 = arith.constant dense<0.000000e+00> : vector<4x128xf32>
    %45 = tpu.matmul %44, %43, %cst_34 {dimension_numbers = #tpu.dot_dimension_numbers<[1], [1], [0], [0], [0, 0, 1, 0], [], []>} : vector<4x128xbf16>, vector<128x128xbf16>, vector<4x128xf32> -> vector<4x128xf32>
    %46 = vector.extract_strided_slice %45 {offsets = [3, 0], sizes = [1, 128], strides = [1, 1]} : vector<4x128xf32> to vector<1x128xf32>
    %cst_35 = arith.constant 1.000000e+00 : f32
    %47 = vector.broadcast %cst_35 : f32 to vector<1x128xf32>
    %48 = arith.divf %47, %46 : vector<1x128xf32>
    %49 = vector.broadcast %48 : vector<1x128xf32> to vector<4x128xf32>
    %50 = arith.mulf %45, %49 : vector<4x128xf32>
    %51 = arith.subf %12, %50 : vector<4x128xf32>
    %52 = arith.mulf %51, %51 : vector<4x128xf32>
    %cst_36 = arith.constant dense<0.000000e+00> : vector<128xf32>
    %53 = vector.multi_reduction <add>, %52, %cst_36 [0] : vector<4x128xf32> to vector<128xf32>
    %54 = vector.shape_cast %53 : vector<128xf32> to vector<1x128xf32>
    %55 = math.sqrt %54 : vector<1x128xf32>
    %cst_37 = arith.constant 9.99999997E-7 : f32
    %56 = vector.broadcast %cst_37 : f32 to vector<4x128xf32>
    %57 = arith.addf %51, %56 : vector<4x128xf32>
    %58 = arith.mulf %57, %57 : vector<4x128xf32>
    %cst_38 = arith.constant dense<0.000000e+00> : vector<128xf32>
    %59 = vector.multi_reduction <add>, %58, %cst_38 [0] : vector<4x128xf32> to vector<128xf32>
    %60 = vector.shape_cast %59 : vector<128xf32> to vector<1x128xf32>
    %61 = math.sqrt %60 : vector<1x128xf32>
    %cst_39 = arith.constant dense<0.000000e+00> : vector<1xf32>
    %62 = vector.multi_reduction <add>, %61, %cst_39 [1] : vector<1x128xf32> to vector<1xf32>
    %63 = vector.shape_cast %62 : vector<1xf32> to vector<1x1xf32>
    %cst_40 = arith.constant 1.280000e+02 : f32
    %64 = vector.broadcast %cst_40 : f32 to vector<1x1xf32>
    %65 = arith.divf %63, %64 : vector<1x1xf32>
    %cst_41 = arith.constant dense<0.000000e+00> : vector<1xf32>
    %66 = vector.multi_reduction <add>, %55, %cst_41 [1] : vector<1x128xf32> to vector<1xf32>
    %67 = vector.shape_cast %66 : vector<1xf32> to vector<1x1xf32>
    %cst_42 = arith.constant 1.280000e+02 : f32
    %68 = vector.broadcast %cst_42 : f32 to vector<1x1xf32>
    %69 = arith.divf %67, %68 : vector<1x1xf32>
    %cst_43 = arith.constant 1.000000e+00 : f32
    %70 = vector.broadcast %cst_43 : f32 to vector<1x1xf32>
    %71 = arith.mulf %69, %70 : vector<1x1xf32>
    %cst_44 = arith.constant 9.99999974E-6 : f32
    %72 = vector.broadcast %cst_44 : f32 to vector<1x1xf32>
    %73 = arith.addf %71, %72 : vector<1x1xf32>
    %74 = vector.broadcast %73 : vector<1x1xf32> to vector<1x128xf32>
    %75 = arith.cmpf ole, %55, %74 : vector<1x128xf32>
    %cst_45 = arith.constant 1.000000e+00 : f32
    %cst_46 = arith.constant 0.000000e+00 : f32
    %76 = vector.broadcast %cst_45 : f32 to vector<1x128xf32>
    %77 = vector.broadcast %cst_46 : f32 to vector<1x128xf32>
    %78 = arith.select %75, %76, %77 : vector<1x128xi1>, vector<1x128xf32>
    %79 = vector.extract_strided_slice %50 {offsets = [0, 0], sizes = [3, 128], strides = [1, 1]} : vector<4x128xf32> to vector<3x128xf32>
    %cst_47 = arith.constant dense<0.000000e+00> : vector<1xf32>
    %80 = vector.multi_reduction <add>, %78, %cst_47 [1] : vector<1x128xf32> to vector<1xf32>
    %81 = vector.shape_cast %80 : vector<1xf32> to vector<1x1xf32>
    %cst_48 = arith.constant 1.000000e+00 : f32
    %82 = vector.broadcast %cst_48 : f32 to vector<1x1xf32>
    %83 = arith.divf %82, %81 : vector<1x1xf32>
    %84 = vector.broadcast %78 : vector<1x128xf32> to vector<3x128xf32>
    %85 = arith.mulf %79, %84 : vector<3x128xf32>
    %cst_49 = arith.constant dense<0.000000e+00> : vector<3xf32>
    %86 = vector.multi_reduction <add>, %85, %cst_49 [1] : vector<3x128xf32> to vector<3xf32>
    %87 = vector.shape_cast %86 : vector<3xf32> to vector<3x1xf32>
    %88 = vector.broadcast %83 : vector<1x1xf32> to vector<3x1xf32>
    %89 = arith.mulf %87, %88 : vector<3x1xf32>
    %90 = vector.broadcast %78 : vector<1x128xf32> to vector<3x128xf32>
    %91 = arith.mulf %14, %90 : vector<3x128xf32>
    %cst_50 = arith.constant dense<0.000000e+00> : vector<3xf32>
    %92 = vector.multi_reduction <add>, %91, %cst_50 [1] : vector<3x128xf32> to vector<3xf32>
    %93 = vector.shape_cast %92 : vector<3xf32> to vector<3x1xf32>
    %94 = vector.broadcast %83 : vector<1x1xf32> to vector<3x1xf32>
    %95 = arith.mulf %93, %94 : vector<3x1xf32>
    %96 = vector.broadcast %89 : vector<3x1xf32> to vector<3x128xf32>
    %97 = arith.subf %79, %96 : vector<3x128xf32>
    %98 = vector.broadcast %78 : vector<1x128xf32> to vector<3x128xf32>
    %99 = arith.mulf %97, %98 : vector<3x128xf32>
    %100 = vector.broadcast %95 : vector<3x1xf32> to vector<3x128xf32>
    %101 = arith.subf %14, %100 : vector<3x128xf32>
    %102 = vector.broadcast %78 : vector<1x128xf32> to vector<3x128xf32>
    %103 = arith.mulf %101, %102 : vector<3x128xf32>
    %cst_51 = arith.constant dense<0.000000e+00> : vector<3x3xf32>
    %104 = tpu.matmul %103, %99, %cst_51 {dimension_numbers = #tpu.dot_dimension_numbers<[1], [1], [0], [0], [0, 0, 1, 0], [], []>, precision = #tpu.contract_precision<fp32>} : vector<3x128xf32>, vector<3x128xf32>, vector<3x3xf32> -> vector<3x3xf32>
    %c0_52 = arith.constant 0 : index
    %c0_53 = arith.constant 0 : index
    %c0_54 = arith.constant 0 : index
    %105 = vector.load %arg2[%c0_52, %c0_53, %c0_54] : memref<1x8x128xf32, #tpu.memory_space<vmem>>, vector<1x3x3xf32>
    %106 = vector.shape_cast %105 : vector<1x3x3xf32> to vector<3x3xf32>
    %107 = vector.shape_cast %104 : vector<3x3xf32> to vector<1x3x3xf32>
    tpu.vector_store %arg2[%c0_52, %c0_53, %c0_54], %107 {strides = array<i32>} : memref<1x8x128xf32, #tpu.memory_space<vmem>>, vector<1x3x3xf32>,
    %c0_55 = arith.constant 0 : index
    %c0_56 = arith.constant 0 : index
    %c3_57 = arith.constant 3 : index
    %108 = vector.load %arg2[%c0_55, %c0_56, %c3_57] : memref<1x8x128xf32, #tpu.memory_space<vmem>>, vector<1x3x1xf32>
    %109 = vector.shape_cast %108 : vector<1x3x1xf32> to vector<3x1xf32>
    %110 = vector.shape_cast %95 : vector<3x1xf32> to vector<1x3x1xf32>
    tpu.vector_store %arg2[%c0_55, %c0_56, %c3_57], %110 {strides = array<i32>} : memref<1x8x128xf32, #tpu.memory_space<vmem>>, vector<1x3x1xf32>,
    %c0_58 = arith.constant 0 : index
    %c0_59 = arith.constant 0 : index
    %c4_60 = arith.constant 4 : index
    %111 = vector.load %arg2[%c0_58, %c0_59, %c4_60] : memref<1x8x128xf32, #tpu.memory_space<vmem>>, vector<1x3x1xf32>
    %112 = vector.shape_cast %111 : vector<1x3x1xf32> to vector<3x1xf32>
    %113 = vector.shape_cast %89 : vector<3x1xf32> to vector<1x3x1xf32>
    tpu.vector_store %arg2[%c0_58, %c0_59, %c4_60], %113 {strides = array<i32>} : memref<1x8x128xf32, #tpu.memory_space<vmem>>, vector<1x3x1xf32>,
    %c0_61 = arith.constant 0 : index
    %c0_62 = arith.constant 0 : index
    %c5_63 = arith.constant 5 : index
    %114 = vector.load %arg2[%c0_61, %c0_62, %c5_63] : memref<1x8x128xf32, #tpu.memory_space<vmem>>, vector<1x1x1xf32>
    %115 = vector.shape_cast %114 : vector<1x1x1xf32> to vector<1x1xf32>
    %116 = vector.shape_cast %65 : vector<1x1xf32> to vector<1x1x1xf32>
    tpu.vector_store %arg2[%c0_61, %c0_62, %c5_63], %116 {strides = array<i32>} : memref<1x8x128xf32, #tpu.memory_space<vmem>>, vector<1x1x1xf32>,
    return
  }
  func.func @transform_0(%arg0: i32) -> (i32, i32, i32) {
    %c0_i32 = arith.constant 0 : i32
    %c0_i32_0 = arith.constant 0 : i32
    %c0_i32_1 = arith.constant 0 : i32
    return %arg0, %c0_i32, %c0_i32_0 : i32, i32, i32
  }
  func.func @transform_1(%arg0: i32) -> (i32, i32, i32) {
    %c0_i32 = arith.constant 0 : i32
    %c0_i32_0 = arith.constant 0 : i32
    %c0_i32_1 = arith.constant 0 : i32
    return %arg0, %c0_i32, %c0_i32_0 : i32, i32, i32
  }
}

</mosaic_0001>

<bundles_post_ra>
// kernel: tpu_custom_call.1
= control target key start
LH: loop header
LB: loop body
LE: loop exit
PB: predicated region body
PF: predicated region fallthrough
CT: control target
= control target key end

     0   :  { %6 = vsyncpa [#allocation5], 0  ;;  %s3298_s0 = inlined_call_operand.hbm [shape: f32[2,8,128], index: 0, kind: input, shape index: {}]   ;;  %s3299_s1 = inlined_call_operand.hbm [shape: f32[2,8,128], index: 1, kind: output, shape index: {}]  }
   0x1   :  { %8 = vsyncpa [#allocation5 + $0x1], 0 }
   0x2   :  { %9 = vsyncpa [#allocation6], 0 }
   0x3   :  { %11 = vsyncpa [#allocation6 + $0x1], 0  ;;  %s2777_s6 = smov 0   ;;  %s2779_s7 = smov 0  }
   0x4   :  { %s2781_s8 = smov 0   ;;  %s2783_s9 = smov 0  }
   0x5 LB: > { %s2798_s10 = sadd.s32 4294967295, %s2759_s9   ;;  %s2109_s11 = sadd.s32 4294967294, %s2759_s9   ;;  %s2759_s9 = sphi %s2783_s9, %s3314_s9   ;;  %s2755_s8 = sphi %s2781_s8, %s3313_s8   ;;  %s2751_s7 = sphi %s2779_s7, %s3312_s7   ;;  %s2747_s6 = sphi %s2777_s6, %s3311_s6  }
   0x6   : > { %s2802_s12 = sadd.s32 1, %s2759_s9   ;;  %s24_s13 = sadd.s32 1, %s2755_s8 }
   0x7   : > { %s21_s14 = ssub.s32 %s2759_s9, %s2802_s12  ;;  %p31_p0 = scmp.ne.s32.totalorder %s2755_s8, %s2751_s7 }
   0x8   : > { %p22_p1 = scmp.eq.s32.totalorder %s21_s14, 0  ;;  %p32_p2 = scmp.eq.s32.totalorder %s2759_s9, 0 }
   0x9   : > { %p37_p3 = scmp.ne.s32.totalorder %s2751_s7, %s2747_s6  ;;  %p38_p4 = scmp.eq.s32.totalorder %s2798_s10, 0 }
   0xa   : > { %s2814_s15 = scalar_select %p22_p1, %s2755_s8, %s24_s13  }
   0xb   : > { %p2816_p5 = por %p32_p2, %p31_p0  ;;  %p2820_p6 = por %p38_p4, %p37_p3 }
   0xc   : > { %p61_p7 = scmp.eq.s32.totalorder %s2798_s10, 1  ;;  %p67_p8 = scmp.eq.s32.totalorder %s2109_s11, 1 }
   0xd   : > { %p2552_p10 = scmp.lt.s32.totalorder %s2759_s9, 2  ;;  %s87_s20 = sand.u32 1, %s2755_s8  }
   0xe   : > { %p2827_p11 = por %p61_p7, %p31_p0  ;;  %p2831_p12 = por %p67_p8, %p37_p3 }
   0xf   : > { %s2113_s21 = sshll.u32 %s2759_s9, 7  ;;  %s2112_s22 = sshll.u32 %s87_s20, 3 }
  0x10   : > { %s3303_s18 = scalar_select %p2827_p11, 1, 0 }
  0x11   : > { %s3304_s19 = scalar_select %p2831_p12, 1, 0 }
  0x12   : > { %s2840_s25 = scalar_lea.hbm %s3298_s0, %s2113_s21  ;;  %s91_s26 = scalar_lea.vmem [#allocation4], %s2112_s22 }
  0x13   : > { %s98_s27 = sshll.u32 %s91_s26, 4  ;;  %p2844_p13 = pnand %p2552_p10, %p2816_p5  ;;  %s2848_s27 = int_to_ptr.vmem [resolvable:$true] %s98_s27 }
  0x14   : > { %s88_s29 = scalar_lea.sflag [#allocation5], %s87_s20  ;;  %s2663_s30 = scalar_lea.hbm %s2840_s25, 128 }
  0x15   : > { %p2664_p2 = scmp.ne.s32.totalorder %s2840_s25, %s2663_s30  ;;  %p2665_p3 = pneg %p2844_p13 }
  0x16   : > { %s2668_s4 = scalar_lea.hbm %s3298_s0, 256  ;;  %p2669_p5 = scmp.lt.u32.totalorder %s2840_s25, %s3298_s0 }
  0x17   : > { %p2666_p4 = pnand %p2665_p3, %p2664_p2  ;;  %p2670_p8 = scmp.lt.u32.totalorder %s2668_s4, %s2663_s30 }
  0x18   : > { %p2672_p9 = scmp.lt.u32.totalorder %s2663_s30, %s2840_s25 }
  0x19   : > { %p2667_p7 = pneg %p2666_p4  ;;  %p2671_p10 = por %p2670_p8, %p2669_p5 }
  0x1b   : > { %p2673_p0 = por %p2672_p9, %p2671_p10 }
  0x1d   : > { %p2674_p1 = pnand %p2673_p0, %p2667_p7 }
  0x1f   : > { %2677 = shalt.err (!%p2674_p1)
}
  0x20   : > { %s2678_s13 = scalar_lea.vmem %s2848_s27, 128  ;;  %s2761_s14 = smov [#allocation4]  }
  0x21   : > { %p2679_p2 = scmp.ne.s32.totalorder %s2848_s27, %s2678_s13  ;;  %s2683_s16 = sshll.u32 %s2761_s14, 4  ;;  %s2684_s16 = int_to_ptr.vmem [resolvable:$false] %s2683_s16 }
  0x22   : > { %s2685_s20 = scalar_lea.vmem %s2684_s16, 256  ;;  %p2686_p11 = scmp.lt.s32.totalorder %s2848_s27, %s2684_s16 }
  0x23   : > { %p2681_p4 = pnand %p2679_p2, %p2665_p3  ;;  %p2687_p5 = scmp.lt.s32.totalorder %s2685_s20, %s2678_s13 }
  0x25   : > { %p2682_p12 = pneg %p2681_p4  ;;  %p2688_p8 = por %p2687_p5, %p2686_p11 }
  0x27   : > { %p2689_p9 = pnand %p2688_p8, %p2682_p12 }
  0x29   : > { %2692 = shalt.err (!%p2689_p9)
}
  0x2a   : > { %2547 = dma.hbm_to_vmem [thread:$0]  (!%p2844_p13), %s2840_s25, 128, %s2848_s27, %s88_s29  }
  0x2b   : > { %p3306_p0 = scmp.lt.s32.totalorder %s2759_s9, 3  ;;  %p3307_p1 = scmp.ge.s32.totalorder %s2759_s9, 1 }
  0x2d   : > { %p104_p3 = pnand %p3307_p1, %p3306_p0 }
  0x2e   : > { %s2882_s21 = sand.u32 (!%p104_p3), 1, %s2751_s7  }
  0x2f   : > { %107 = sbr.rel (%p104_p3) target bundleno = 1638 (0x666), region = 24  ;;  %s2115_s22 = sshll.u32 (!%p104_p3), %s2882_s21, 3 }
  0x30   : > { %s110_s23 = scalar_lea.sflag (!%p104_p3), [#allocation5], %s2882_s21  ;;  %s2888_s24 = scalar_lea.vmem (!%p104_p3), [#allocation4], %s2115_s22 }
  0x36   : > { %2738 = dma.done.wait (%p2820_p6), %s110_s23, 128  }
  0x37   : > { %2740 = vsyncadd (%p2820_p6), %s110_s23, 4294967168  ;;  %v2762_v0 = vmov 0.5   ;;  %v2763_v1 = vmov 0.0   ;;  %v2897_v2 = vld [vmem:[%s2888_s24] sm:$0xff]  ;;  %vm140_vm0 = vcmask 1042432   ;;  %v2764_v22 = vmov 1.0  }
  0x38   : > { %134 = vst [vmem:[#allocation2 + $0x4] sm:$0x1] %v2762_v0  ;;  %135 = vst [vmem:[#allocation2 + $0x5] sm:$0x7] %v2763_v1  ;;  %v139_v3 = vmul.f32 %v2897_v2, %v2897_v2  ;;  %v158_v4 = vmul.f32 0.5, %v2897_v2  ;;  %v162_v21 = vmul.f32 -2.0, %v2897_v2 }
  0x39   : > { %137 = vst [vmem:[#allocation3 + $0x5] sm:$0x7] %v2763_v1  ;;  %136 = vst [vmem:[#allocation3 + $0x3] sm:$0x1] %v2764_v22  ;;  %vm199_vm1 = vcmask 64512   ;;  %vm2765_vm2 = vmmov 0  }
  0x3a   : > { %v141_v5 = vsel %vm140_vm0, %v139_v3, 0.0  ;;  %v149_v6 = vrot.slane %v139_v3, 4  ;;  %159 = vst [vmem:[#allocation2] sm:$0x7] %v158_v4  ;;  %163 = vst [vmem:[#allocation3 - $0x4] sm:$0x70] %v162_v21 }
  0x3b   : > { %v142_v7 = vrot.slane %v141_v5, 4  ;;  %vm1512_vm3 = vcmask 1043456   ;;  %s3225_s17 = scalar_lea.vmem [#allocation7], %s2115_s22  ;;  %vm2017_vm9 = vcmask 18432   ;;  %vm2019_vm10 = vcmask 26648   ;;  %s2118_s25 = sshll.u32 %s2798_s10, 7 }
  0x3c   : > { %v151_v8 = vsel %vm140_vm0, %v149_v6, 0.0  ;;  %133 = vst [vmem:[%s3225_s17] sm:$0xff] %v2763_v1  ;;  %s2039_s26 = sshll.u32 %s3225_s17, 4  ;;  %vm2021_vm11 = vcmask 34848   ;;  %vm2023_vm12 = vcmask 41000   ;;  %s3252_s29 = scalar_lea.hbm %s3299_s1, %s2118_s25  ;;  %s3254_s26 = int_to_ptr.vmem [resolvable:$true] %s2039_s26 }
  0x3d   : > { %v143_v9 = vadd.f32 %v142_v7, %v141_v5  ;;  %v152_v10 = vrot.slane %v151_v8, 4  ;;  %s2026_s10 = scalar_lea.sflag [#allocation6], %s2882_s21  ;;  %s2693_s30 = scalar_lea.vmem %s3254_s26, 128 }
  0x3e   : > { %p2694_p6 = scmp.ne.s32.totalorder %s3254_s26, %s2693_s30  ;;  %p3308_p11 = scmp.ne.s32.totalorder %s3303_s18, 0 }
  0x3f   : > { %v144_v11 = vrot.slane %v143_v9, 2  ;;  %v153_v13 = vadd.f32 %v152_v10, %v151_v8  ;;  %s2766_s2 = smov [#allocation7]  }
  0x40   : > { %p2695_p12 = pnand %p2694_p6, %p3308_p11  ;;  %s2697_s3 = sshll.u32 %s2766_s2, 4  ;;  %s2698_s3 = int_to_ptr.vmem [resolvable:$false] %s2697_s3 }
  0x41   : > { %v145_v12 = vadd.f32 %v144_v11, %v143_v9  ;;  %v154_v16 = vrot.slane %v153_v13, 2  ;;  %s2699_s4 = scalar_lea.vmem %s2698_s3, 256  ;;  %p2700_p7 = scmp.lt.s32.totalorder %s3254_s26, %s2698_s3 }
  0x42   : > { %p2696_p13 = pneg %p2695_p12  ;;  %p2701_p10 = scmp.lt.s32.totalorder %s2699_s4, %s2693_s30 }
  0x43   : > { %v146_v14 = vrot.slane %v145_v12, 1  ;;  %v155_v18 = vadd.f32 %v154_v16, %v153_v13 }
  0x44   : > { %p2702_p2 = por %p2701_p10, %p2700_p7 }
  0x45   : > { %v147_v15 = vadd.f32 %v146_v14, %v145_v12  ;;  %v156_v19 = vrot.slane %v155_v18, 1 }
  0x46   : > { %p2703_p4 = pnand %p2702_p2, %p2696_p13 }
  0x47   : > { %v160_v17 = vmul.f32 0.5, %v147_v15  ;;  %v157_v20 = vadd.f32 %v156_v19, %v155_v18 }
  0x49   : > { %161 = vst [vmem:[#allocation2 + $0x3] sm:$0x1] %v160_v17  ;;  %164 = vst [vmem:[#allocation3 + $0x4] sm:$0x1] %v157_v20 }
  0x50   : > { %v165_v23 = vld [vmem:[#allocation2] sm:$0xff]  ;;  %v166_v24 = vld [vmem:[#allocation3] sm:$0xff] }
  0x51   : > { %167 = vxpose.xlu0.b32.start.end [1/1] (short) %v165_v23, 128  ;;  %v2905_v25 = vand.u32 4294901760, %v166_v24 }
  0x53   : > { %v476_v26 = vsub.f32 %v166_v24, %v2905_v25  ;;  %2244 = vmatprep.subr.mxu1 %v2905_v25 }
  0x54   : > { %2245 = vmatpush3.msra.mxu1 %v2905_v25 }
  0x55   : > { %2296 = vmatprep.subr.mxu0 %v476_v26  ;;  %v2911_v27 = vand.u32 4294901760, %v476_v26 }
  0x56   : > { %2297 = vmatpush3.msra.mxu0 %v476_v26 }
  0x57   : > { %2322 = vmatprep.subr.mxu0 %v2905_v25  ;;  %v478_v28 = vsub.f32 %v476_v26, %v2911_v27 }
  0x59   : > { %v479_v29 = vand.u32 4294901760, %v478_v28 }
  0x5b   : > { %2270 = vmatprep.subr.mxu1 %v479_v29 }
  0xd1   : > { %v183_v30 = vpop.trf.xlu0 }
  0xd2   : > { %v201_v31 = vsel %vm199_vm1, %v183_v30, 0 }
  0xd3   : > { %v2915_v32 = vand.u32 4294901760, %v201_v31 }
  0xd5   : > { %v2918_v33 = vsub.f32 %v201_v31, %v2915_v32  ;;  %v184_v34 = vpop.trf.xlu0 }
  0xd6   : > { %v204_v35 = vsel %vm199_vm1, %v184_v34, 0 }
  0xd7   : > { %v2921_v36 = vand.u32 4294901760, %v204_v35  ;;  %2298 = vmatprep.mubr.f32.mxu0 %v2918_v33  ;;  %v316_v37 = vand.u32 4294901760, %v2918_v33 }
  0xd9   : > { %v2926_v38 = vsub.f32 %v204_v35, %v2921_v36  ;;  %v185_v39 = vpop.trf.xlu0  ;;  %v317_v40 = vsub.f32 %v2918_v33, %v316_v37 }
  0xda   : > { %v207_v41 = vsel %vm199_vm1, %v185_v39, 0 }
  0xdb   : > { %v326_v42 = vand.u32 4294901760, %v2926_v38  ;;  %v2933_v43 = vand.u32 4294901760, %v207_v41  ;;  %2299 = vmatmul.mubr.f32.vlgmr.msra.gmra.mrb[0].mxu0 %v2926_v38  ;;  %v318_v44 = vand.u32 4294901760, %v317_v40 }
  0xdc   : > { %2323 = vmatpush3.msra.mxu0 %v2905_v25 }
  0xdd   : > { %v2938_v45 = vsub.f32 %v207_v41, %v2933_v43  ;;  %2246 = vmatprep.mubr.f32.mxu1 %v318_v44  ;;  %v186_v46 = vpop.trf.xlu0  ;;  %v327_v47 = vsub.f32 %v2926_v38, %v326_v42  ;;  %2348 = vmatprep.subr.mxu0 %v2911_v27 }
  0xde   : > { %v210_v48 = vsel %vm199_vm1, %v186_v46, 0 }
  0xdf   : > { %v336_v49 = vand.u32 4294901760, %v2938_v45  ;;  %v2946_v50 = vand.u32 4294901760, %v210_v48  ;;  %2301 = vmatprep.mubr.f32.mxu0 %v2938_v45  ;;  %v328_v51 = vand.u32 4294901760, %v327_v47 }
  0xe1   : > { %v2950_v52 = vsub.f32 %v210_v48, %v2946_v50  ;;  %2247 = vmatmul.mubr.f32.vlgmr.msra.gmra.mrb[0].mxu1 %v328_v51  ;;  %v187_v53 = vpop.trf.xlu0  ;;  %v337_v54 = vsub.f32 %v2938_v45, %v336_v49 }
  0xe2   : > { %v213_v55 = vsel %vm199_vm1, %v187_v53, 0  ;;  %2271 = vmatpush3.msra.mxu1 %v479_v29 }
  0xe3   : > { %v346_v56 = vand.u32 4294901760, %v2950_v52  ;;  %v2957_v57 = vand.u32 4294901760, %v213_v55  ;;  %2302 = vmatmul.mubr.f32.gmra.mrb[2].mxu0 %v2950_v52  ;;  %v338_v58 = vand.u32 4294901760, %v337_v54  ;;  %2400 = vmatprep.subr.bf16.mxu1 %v2763_v1 }
  0xe5   : > { %v2962_v59 = vsub.f32 %v213_v55, %v2957_v57  ;;  %2249 = vmatprep.mubr.f32.mxu1 %v338_v58  ;;  %v188_v60 = vpop.trf.xlu0  ;;  %v347_v61 = vsub.f32 %v2950_v52, %v346_v56 }
  0xe6   : > { %v216_v62 = vsel %vm199_vm1, %v188_v60, 0 }
  0xe7   : > { %v356_v63 = vand.u32 4294901760, %v2962_v59  ;;  %v2969_v0 = vand.u32 4294901760, %v216_v62  ;;  %2304 = vmatprep.mubr.f32.mxu0 %v2962_v59  ;;  %v348_v3 = vand.u32 4294901760, %v347_v61 }
  0xe9   : > { %v2973_v4 = vsub.f32 %v216_v62, %v2969_v0  ;;  %2250 = vmatmul.mubr.f32.gmra.mrb[2].mxu1 %v348_v3  ;;  %v189_v5 = vpop.trf.xlu0  ;;  %v357_v6 = vsub.f32 %v2962_v59, %v356_v63 }
  0xea   : > { %v219_v7 = vsel %vm199_vm1, %v189_v5, 0 }
  0xeb   : > { %v366_v8 = vand.u32 4294901760, %v2973_v4  ;;  %v2980_v9 = vand.u32 4294901760, %v219_v7  ;;  %2305 = vmatmul.mubr.f32.gmra.mrb[4].mxu0 %v2973_v4  ;;  %v358_v10 = vand.u32 4294901760, %v357_v6 }
  0xed   : > { %v2984_v11 = vsub.f32 %v219_v7, %v2980_v9  ;;  %2252 = vmatprep.mubr.f32.mxu1 %v358_v10  ;;  %v190_v12 = vpop.trf.xlu0  ;;  %v367_v13 = vsub.f32 %v2973_v4, %v366_v8 }
  0xee   : > { %v222_v14 = vsel %vm199_vm1, %v190_v12, 0 }
  0xef   : > { %v376_v15 = vand.u32 4294901760, %v2984_v11  ;;  %v2991_v16 = vand.u32 4294901760, %v222_v14  ;;  %2307 = vmatprep.mubr.f32.mxu0 %v2984_v11  ;;  %v368_v17 = vand.u32 4294901760, %v367_v13 }
  0xf1   : > { %v2995_v18 = vsub.f32 %v222_v14, %v2991_v16  ;;  %2253 = vmatmul.mubr.f32.gmra.mrb[4].mxu1 %v368_v17  ;;  %v191_v19 = vpop.trf.xlu0  ;;  %v377_v20 = vsub.f32 %v2984_v11, %v376_v15 }
  0xf2   : > { %v225_v21 = vsel %vm199_vm1, %v191_v19, 0 }
  0xf3   : > { %v386_v22 = vand.u32 4294901760, %v2995_v18  ;;  %v3002_v23 = vand.u32 4294901760, %v225_v21  ;;  %2308 = vmatmul.mubr.f32.gmra.mrb[6].mxu0 %v2995_v18  ;;  %v378_v24 = vand.u32 4294901760, %v377_v20 }
  0xf5   : > { %v3006_v26 = vsub.f32 %v225_v21, %v3002_v23  ;;  %2255 = vmatprep.mubr.f32.mxu1 %v378_v24  ;;  %v192_v28 = vpop.trf.xlu0  ;;  %v387_v29 = vsub.f32 %v2995_v18, %v386_v22 }
  0xf6   : > { %v228_v30 = vsel %vm199_vm1, %v192_v28, 0 }
  0xf7   : > { %v396_v31 = vand.u32 4294901760, %v3006_v26  ;;  %v3013_v34 = vand.u32 4294901760, %v228_v30  ;;  %2310 = vmatprep.mubr.f32.mxu0 %v3006_v26  ;;  %v388_v35 = vand.u32 4294901760, %v387_v29 }
  0xf9   : > { %v3017_v39 = vsub.f32 %v228_v30, %v3013_v34  ;;  %2256 = vmatmul.mubr.f32.gmra.mrb[6].mxu1 %v388_v35  ;;  %v193_v40 = vpop.trf.xlu0  ;;  %v397_v41 = vsub.f32 %v3006_v26, %v396_v31 }
  0xfa   : > { %v231_v44 = vsel %vm199_vm1, %v193_v40, 0 }
  0xfb   : > { %v406_v46 = vand.u32 4294901760, %v3017_v39  ;;  %v3024_v47 = vand.u32 4294901760, %v231_v44  ;;  %2311 = vmatmul.mubr.f32.gmra.mrb[8].mxu0 %v3017_v39  ;;  %v398_v48 = vand.u32 4294901760, %v397_v41 }
  0xfd   : > { %v3028_v51 = vsub.f32 %v231_v44, %v3024_v47  ;;  %2258 = vmatprep.mubr.f32.mxu1 %v398_v48  ;;  %v194_v53 = vpop.trf.xlu0  ;;  %v407_v54 = vsub.f32 %v3017_v39, %v406_v46 }
  0xfe   : > { %v234_v55 = vsel %vm199_vm1, %v194_v53, 0 }
  0xff   : > { %v416_v58 = vand.u32 4294901760, %v3028_v51  ;;  %v3035_v60 = vand.u32 4294901760, %v234_v55  ;;  %2313 = vmatprep.mubr.f32.mxu0 %v3028_v51  ;;  %v408_v61 = vand.u32 4294901760, %v407_v54 }
 0x101   : > { %v3039_v62 = vsub.f32 %v234_v55, %v3035_v60  ;;  %2259 = vmatmul.mubr.f32.gmra.mrb[8].mxu1 %v408_v61  ;;  %v195_v3 = vpop.trf.xlu0  ;;  %v417_v5 = vsub.f32 %v3028_v51, %v416_v58 }
 0x102   : > { %v237_v6 = vsel %vm199_vm1, %v195_v3, 0 }
 0x103   : > { %v426_v7 = vand.u32 4294901760, %v3039_v62  ;;  %v3046_v10 = vand.u32 4294901760, %v237_v6  ;;  %2314 = vmatmul.mubr.f32.gmra.mrb[10].mxu0 %v3039_v62  ;;  %v418_v12 = vand.u32 4294901760, %v417_v5 }
 0x105   : > { %v435_v13 = vsub.f32 %v237_v6, %v3046_v10  ;;  %2261 = vmatprep.mubr.f32.mxu1 %v418_v12  ;;  %v196_v14 = vpop.trf.xlu0  ;;  %v427_v17 = vsub.f32 %v3039_v62, %v426_v7 }
 0x106   : > { %v240_v19 = vsel %vm199_vm1, %v196_v14, 0 }
 0x107   : > { %v436_v20 = vand.u32 4294901760, %v435_v13  ;;  %v3052_v21 = vand.u32 4294901760, %v240_v19  ;;  %2316 = vmatprep.mubr.f32.mxu0 %v435_v13  ;;  %v428_v24 = vand.u32 4294901760, %v427_v17 }
 0x109   : > { %v445_v28 = vsub.f32 %v240_v19, %v3052_v21  ;;  %2262 = vmatmul.mubr.f32.gmra.mrb[10].mxu1 %v428_v24  ;;  %v197_v29 = vpop.trf.xlu0  ;;  %v437_v30 = vsub.f32 %v435_v13, %v436_v20 }
 0x10a   : > { %v243_v35 = vsel %vm199_vm1, %v197_v29, 0 }
 0x10b   : > { %v446_v40 = vand.u32 4294901760, %v445_v28  ;;  %v3056_v41 = vand.u32 4294901760, %v243_v35  ;;  %2317 = vmatmul.mubr.f32.gmra.mrb[12].mxu0 %v445_v28  ;;  %v438_v44 = vand.u32 4294901760, %v437_v30 }
 0x10d   : > { %v455_v48 = vsub.f32 %v243_v35, %v3056_v41  ;;  %2264 = vmatprep.mubr.f32.mxu1 %v438_v44  ;;  %v198_v53 = vpop.trf.xlu0  ;;  %v447_v54 = vsub.f32 %v445_v28, %v446_v40 }
 0x10e   : > { %v246_v55 = vsel %vm199_vm1, %v198_v53, 0 }
 0x10f   : > { %v456_v61 = vand.u32 4294901760, %v455_v48  ;;  %v3060_v62 = vand.u32 4294901760, %v246_v55  ;;  %2319 = vmatprep.mubr.f32.mxu0 %v455_v48  ;;  %v448_v3 = vand.u32 4294901760, %v447_v54 }
 0x111   : > { %v465_v5 = vsub.f32 %v246_v55, %v3060_v62  ;;  %2265 = vmatmul.mubr.f32.gmra.mrb[12].mxu1 %v448_v3  ;;  %v457_v6 = vsub.f32 %v455_v48, %v456_v61 }
 0x113   : > { %v466_v12 = vand.u32 4294901760, %v465_v5  ;;  %2320 = vmatmul.mubr.f32.gmra.mrb[14].mxu0 %v465_v5  ;;  %v458_v13 = vand.u32 4294901760, %v457_v6 }
 0x114   : > { %2324 = vmatprep.mubr.f32.mxu0 %v316_v37 }
 0x115   : > { %2267 = vmatprep.mubr.f32.mxu1 %v458_v13  ;;  %v467_v14 = vsub.f32 %v465_v5, %v466_v12 }
 0x117   : > { %2325 = vmatmul.mubr.f32.vlgmr.msra.gmra.mrb[0].mxu0 %v326_v42  ;;  %v468_v17 = vand.u32 4294901760, %v467_v14 }
 0x118   : > { %2349 = vmatpush3.msra.mxu0 %v2911_v27  ;;  %2327 = vmatprep.mubr.f32.mxu0 %v336_v49 }
 0x119   : > { %2268 = vmatmul.mubr.f32.gmra.mrb[14].mxu1 %v468_v17  ;;  %2374 = vmatprep.subr.mxu0 %v2905_v25 }
 0x11a   : > { %2272 = vmatprep.mubr.f32.mxu1 %v2915_v32 }
 0x11b   : > { %2328 = vmatmul.mubr.f32.gmra.mrb[2].mxu0 %v346_v56 }
 0x11c   : > { %2330 = vmatprep.mubr.f32.mxu0 %v356_v63 }
 0x11d   : > { %2273 = vmatmul.mubr.f32.vlgmr.msra.gmra.mrb[0].mxu1 %v2921_v36 }
 0x11e   : > { %2275 = vmatprep.mubr.f32.mxu1 %v2933_v43 }
 0x11f   : > { %2331 = vmatmul.mubr.f32.gmra.mrb[4].mxu0 %v366_v8 }
 0x120   : > { %2333 = vmatprep.mubr.f32.mxu0 %v376_v15 }
 0x121   : > { %2276 = vmatmul.mubr.f32.gmra.mrb[2].mxu1 %v2946_v50 }
 0x122   : > { %2278 = vmatprep.mubr.f32.mxu1 %v2957_v57 }
 0x123   : > { %2334 = vmatmul.mubr.f32.gmra.mrb[6].mxu0 %v386_v22 }
 0x124   : > { %2336 = vmatprep.mubr.f32.mxu0 %v396_v31 }
 0x125   : > { %2279 = vmatmul.mubr.f32.gmra.mrb[4].mxu1 %v2969_v0 }
 0x126   : > { %2281 = vmatprep.mubr.f32.mxu1 %v2980_v9 }
 0x127   : > { %2337 = vmatmul.mubr.f32.gmra.mrb[8].mxu0 %v406_v46 }
 0x128   : > { %2339 = vmatprep.mubr.f32.mxu0 %v416_v58 }
 0x129   : > { %2282 = vmatmul.mubr.f32.gmra.mrb[6].mxu1 %v2991_v16 }
 0x12a   : > { %2284 = vmatprep.mubr.f32.mxu1 %v3002_v23 }
 0x12b   : > { %2340 = vmatmul.mubr.f32.gmra.mrb[10].mxu0 %v426_v7 }
 0x12c   : > { %2342 = vmatprep.mubr.f32.mxu0 %v436_v20 }
 0x12d   : > { %2285 = vmatmul.mubr.f32.gmra.mrb[8].mxu1 %v3013_v34 }
 0x12e   : > { %2287 = vmatprep.mubr.f32.mxu1 %v3024_v47 }
 0x12f   : > { %2343 = vmatmul.mubr.f32.gmra.mrb[12].mxu0 %v446_v40 }
 0x130   : > { %2345 = vmatprep.mubr.f32.mxu0 %v456_v61 }
 0x131   : > { %2288 = vmatmul.mubr.f32.gmra.mrb[10].mxu1 %v3035_v60 }
 0x132   : > { %2290 = vmatprep.mubr.f32.mxu1 %v3046_v10 }
 0x133   : > { %2346 = vmatmul.mubr.f32.gmra.mrb[14].mxu0 %v466_v12 }
 0x134   : > { %2350 = vmatprep.mubr.f32.mxu0 %v2915_v32 }
 0x135   : > { %2291 = vmatmul.mubr.f32.gmra.mrb[12].mxu1 %v3052_v21 }
 0x136   : > { %2293 = vmatprep.mubr.f32.mxu1 %v3056_v41 }
 0x137   : > { %2351 = vmatmul.mubr.f32.vlgmr.msra.gmra.mrb[0].mxu0 %v2921_v36 }
 0x138   : > { %2375 = vmatpush3.msra.mxu0 %v2905_v25  ;;  %2353 = vmatprep.mubr.f32.mxu0 %v2933_v43 }
 0x139   : > { %2294 = vmatmul.mubr.f32.gmra.mrb[14].mxu1 %v3060_v62 }
 0x13a   : > { %2416 = vmatprep.mubr.msk.bf16.mxu1 %vm2765_vm2, %v2763_v1 }
 0x13b   : > { %2354 = vmatmul.mubr.f32.gmra.mrb[2].mxu0 %v2946_v50 }
 0x13c   : > { %2356 = vmatprep.mubr.f32.mxu0 %v2957_v57 }
 0x13f   : > { %2357 = vmatmul.mubr.f32.gmra.mrb[4].mxu0 %v2969_v0 }
 0x140   : > { %2359 = vmatprep.mubr.f32.mxu0 %v2980_v9 }
 0x143   : > { %2360 = vmatmul.mubr.f32.gmra.mrb[6].mxu0 %v2991_v16 }
 0x144   : > { %2362 = vmatprep.mubr.f32.mxu0 %v3002_v23 }
 0x147   : > { %2363 = vmatmul.mubr.f32.gmra.mrb[8].mxu0 %v3013_v34 }
 0x148   : > { %2365 = vmatprep.mubr.f32.mxu0 %v3024_v47 }
 0x14b   : > { %2366 = vmatmul.mubr.f32.gmra.mrb[10].mxu0 %v3035_v60 }
 0x14c   : > { %2368 = vmatprep.mubr.f32.mxu0 %v3046_v10 }
 0x14f   : > { %2369 = vmatmul.mubr.f32.gmra.mrb[12].mxu0 %v3052_v21 }
 0x150   : > { %2371 = vmatprep.mubr.f32.mxu0 %v3056_v41 }
 0x153   : > { %2372 = vmatmul.mubr.f32.gmra.mrb[14].mxu0 %v3060_v62 }
 0x154   : > { %2376 = vmatprep.mubr.f32.mxu0 %v2915_v32 }
 0x157   : > { %2377 = vmatmul.mubr.f32.vlgmr.msra.gmra.mrb[0].mxu0 %v2921_v36 }
 0x158   : > { %2379 = vmatprep.mubr.f32.mxu0 %v2933_v43 }
 0x15b   : > { %2380 = vmatmul.mubr.f32.gmra.mrb[2].mxu0 %v2946_v50 }
 0x15c   : > { %2382 = vmatprep.mubr.f32.mxu0 %v2957_v57 }
 0x15f   : > { %2383 = vmatmul.mubr.f32.gmra.mrb[4].mxu0 %v2969_v0 }
 0x160   : > { %2385 = vmatprep.mubr.f32.mxu0 %v2980_v9 }
 0x163   : > { %2386 = vmatmul.mubr.f32.gmra.mrb[6].mxu0 %v2991_v16 }
 0x164   : > { %2388 = vmatprep.mubr.f32.mxu0 %v3002_v23 }
 0x167   : > { %2389 = vmatmul.mubr.f32.gmra.mrb[8].mxu0 %v3013_v34 }
 0x168   : > { %2391 = vmatprep.mubr.f32.mxu0 %v3024_v47 }
 0x16b   : > { %2392 = vmatmul.mubr.f32.gmra.mrb[10].mxu0 %v3035_v60 }
 0x16c   : > { %2394 = vmatprep.mubr.f32.mxu0 %v3046_v10 }
 0x16f   : > { %2395 = vmatmul.mubr.f32.gmra.mrb[12].mxu0 %v3052_v21 }
 0x170   : > { %2397 = vmatprep.mubr.f32.mxu0 %v3056_v41 }
 0x173   : > { %2398 = vmatmul.mubr.f32.gmra.mrb[14].mxu0 %v3060_v62 }
 0x1f0   : > { %v2274_v25 = vpop.f32.mrb[0].mxu1 }
 0x1f1   : > { %v546_v27 = vpop.f32.mrb[1].mxu1 }
 0x1f4   : > { %v2277_v32 = vpop.f32.mrb[2].mxu1 }
 0x1f5   : > { %v558_v33 = vpop.f32.mrb[3].mxu1 }
 0x1f8   : > { %v2280_v36 = vpop.f32.mrb[4].mxu1 }
 0x1f9   : > { %v570_v37 = vpop.f32.mrb[5].mxu1 }
 0x1fc   : > { %v2283_v38 = vpop.f32.mrb[6].mxu1 }
 0x1fd   : > { %v582_v42 = vpop.f32.mrb[7].mxu1 }
 0x200   : > { %v2286_v43 = vpop.f32.mrb[8].mxu1 }
 0x201   : > { %v594_v45 = vpop.f32.mrb[9].mxu1 }
 0x204   : > { %v2289_v49 = vpop.f32.mrb[10].mxu1 }
 0x205   : > { %v606_v50 = vpop.f32.mrb[11].mxu1 }
 0x208   : > { %v2292_v52 = vpop.f32.mrb[12].mxu1 }
 0x209   : > { %v618_v56 = vpop.f32.mrb[13].mxu1 }
 0x20c   : > { %v2295_v57 = vpop.f32.mrb[14].mxu1 }
 0x20d   : > { %v630_v59 = vpop.f32.mrb[15].mxu1 }
 0x22a   : > { %v2378_v63 = vpop.f32.mrb[0].mxu0 }
 0x22b   : > { %v2450_v0 = vadd.f32 %v2378_v63, %v2274_v25  ;;  %v1245_v4 = vpop.f32.mrb[1].mxu0 }
 0x22c   : > { %v2451_v8 = vadd.f32 %v1245_v4, %v546_v27 }
 0x22d   : > { %v1340_v9 = vmax.f32 %v2450_v0, 5e-06 }
 0x22e   : > { %v1339_v11 = vmax.f32 %v2451_v8, 5e-06  ;;  %v2381_v15 = vpop.f32.mrb[2].mxu0 }
 0x22f   : > { %2590 = vrcp.f32 %v1340_v9  ;;  %v2452_v16 = vadd.f32 %v2381_v15, %v2277_v32  ;;  %v1257_v18 = vpop.f32.mrb[3].mxu0 }
 0x230   : > { %2592 = vrcp.f32 %v1339_v11  ;;  %v2453_v22 = vadd.f32 %v1257_v18, %v558_v33 }
 0x231   : > { %v1342_v23 = vmax.f32 %v2452_v16, 5e-06 }
 0x232   : > { %v2384_v26 = vpop.f32.mrb[4].mxu0  ;;  %v1341_v31 = vmax.f32 %v2453_v22, 5e-06 }
 0x233   : > { %2594 = vrcp.f32 %v1342_v23  ;;  %v2454_v34 = vadd.f32 %v2384_v26, %v2280_v36  ;;  %v1269_v39 = vpop.f32.mrb[5].mxu0 }
 0x234   : > { %v2455_v46 = vadd.f32 %v1269_v39, %v570_v37  ;;  %2596 = vrcp.f32 %v1341_v31 }
 0x235   : > { %v1344_v51 = vmax.f32 %v2454_v34, 5e-06 }
 0x236   : > { %v2387_v47 = vpop.f32.mrb[6].mxu0  ;;  %v1343_v21 = vmax.f32 %v2455_v46, 5e-06 }
 0x237   : > { %v2456_v58 = vadd.f32 %v2387_v47, %v2283_v38  ;;  %v1281_v60 = vpop.f32.mrb[7].mxu0  ;;  %2598 = vrcp.f32 %v1344_v51 }
 0x238   : > { %v2457_v7 = vadd.f32 %v1281_v60, %v582_v42  ;;  %2600 = vrcp.f32 %v1343_v21 }
 0x239   : > { %v3136_v10 = vpop.eup %2590  ;;  %v1346_v40 = vmax.f32 %v2456_v58, 5e-06 }
 0x23a   : > { %v3138_v19 = vpop.eup %2592  ;;  %v2390_v20 = vpop.f32.mrb[8].mxu0  ;;  %1373 = vmax.xlane.f32.xlu1 %v3136_v10  ;;  %v1345_v55 = vmax.f32 %v2457_v7, 5e-06 }
 0x23b   : > { %v2458_v24 = vadd.f32 %v2390_v20, %v2286_v43  ;;  %v1293_v28 = vpop.f32.mrb[9].mxu0  ;;  %1371 = vmax.xlane.f32.xlu0 %v3138_v19  ;;  %2602 = vrcp.f32 %v1346_v40 }
 0x23c   : > { %v2459_v29 = vadd.f32 %v1293_v28, %v594_v45  ;;  %2604 = vrcp.f32 %v1345_v55 }
 0x23d   : > { %v3142_v30 = vpop.eup %2594  ;;  %v1348_v12 = vmax.f32 %v2458_v24, 5e-06 }
 0x23e   : > { %v2393_v35 = vpop.f32.mrb[10].mxu0  ;;  %1377 = vmax.xlane.f32.xlu1 %v3142_v30  ;;  %v3145_v53 = vpop.eup %2596  ;;  %v1347_v27 = vmax.f32 %v2459_v29, 5e-06 }
 0x23f   : > { %v2460_v41 = vadd.f32 %v2393_v35, %v2289_v49  ;;  %v1305_v44 = vpop.f32.mrb[11].mxu0  ;;  %2606 = vrcp.f32 %v1348_v12 }
 0x240   : > { %v2461_v48 = vadd.f32 %v1305_v44, %v606_v50  ;;  %2608 = vrcp.f32 %v1347_v27 }
 0x241   : > { %v3148_v5 = vpop.eup %2598  ;;  %v1350_v33 = vmax.f32 %v2460_v41, 5e-06 }
 0x242   : > { %v2396_v54 = vpop.f32.mrb[12].mxu0  ;;  %1375 = vmax.xlane.f32.xlu1 %v3145_v53  ;;  %v3151_v25 = vpop.eup %2600  ;;  %v1349_v37 = vmax.f32 %v2461_v48, 5e-06 }
 0x243   : > { %v2462_v61 = vadd.f32 %v2396_v54, %v2292_v52  ;;  %v1317_v62 = vpop.f32.mrb[13].mxu0  ;;  %2610 = vrcp.f32 %v1350_v33 }
 0x244   : > { %v2463_v3 = vadd.f32 %v1317_v62, %v618_v56  ;;  %2612 = vrcp.f32 %v1349_v37 }
 0x245   : > { %v3154_v32 = vpop.eup %2602  ;;  %v1352_v42 = vmax.f32 %v2462_v61, 5e-06 }
 0x246   : > { %v2399_v6 = vpop.f32.mrb[14].mxu0  ;;  %1381 = vmax.xlane.f32.xlu1 %v3148_v5  ;;  %v3157_v36 = vpop.eup %2604  ;;  %v1351_v45 = vmax.f32 %v2463_v3, 5e-06 }
 0x247   : > { %v2464_v13 = vadd.f32 %v2399_v6, %v2295_v57  ;;  %v1329_v14 = vpop.f32.mrb[15].mxu0  ;;  %2614 = vrcp.f32 %v1352_v42 }
 0x248   : > { %v2465_v17 = vadd.f32 %v1329_v14, %v630_v59  ;;  %2616 = vrcp.f32 %v1351_v45 }
 0x249   : > { %v3160_v38 = vpop.eup %2606  ;;  %v1354_v56 = vmax.f32 %v2464_v13, 5e-06 }
 0x24a   : > { %1379 = vmax.xlane.f32.xlu1 %v3151_v25  ;;  %v3163_v43 = vpop.eup %2608  ;;  %v1353_v50 = vmax.f32 %v2465_v17, 5e-06 }
 0x24c   : > { %2618 = vrcp.f32 %v1353_v50 }
 0x24d   : > { %v3166_v49 = vpop.eup %2610  ;;  %2620 = vrcp.f32 %v1354_v56 }
 0x24e   : > { %1385 = vmax.xlane.f32.xlu1 %v3154_v32  ;;  %v3169_v52 = vpop.eup %2612 }
 0x251   : > { %v3172_v57 = vpop.eup %2614 }
 0x252   : > { %1383 = vmax.xlane.f32.xlu1 %v3157_v36  ;;  %v3175_v59 = vpop.eup %2616 }
 0x256   : > { %1389 = vmax.xlane.f32.xlu1 %v3160_v38  ;;  %v3178_v63 = vpop.eup %2618 }
 0x257   : > { %v3181_v0 = vpop.eup %2620 }
 0x25a   : > { %1387 = vmax.xlane.f32.xlu1 %v3163_v43 }
 0x25e   : > { %1393 = vmax.xlane.f32.xlu1 %v3166_v49 }
 0x262   : > { %1391 = vmax.xlane.f32.xlu1 %v3169_v52 }
 0x266   : > { %1397 = vmax.xlane.f32.xlu1 %v3172_v57 }
 0x26a   : > { %1395 = vmax.xlane.f32.xlu1 %v3175_v59 }
 0x26e   : > { %1399 = vmax.xlane.f32.xlu1 %v3178_v63 }
 0x272   : > { %1401 = vmax.xlane.f32.xlu1 %v3181_v0 }
 0x2c7   : > { %v1374_v4 = vpop.xlane.xlu1 %1373 }
 0x2c8   : > { %v1404_v8 = vsub.f32 %v3136_v10, %v1374_v4  ;;  %v1372_v9 = vpop.xlane.xlu0 %1371 }
 0x2c9   : > { %v1403_v11 = vsub.f32 %v3138_v19, %v1372_v9 }
 0x2ca   : > { %v1421_v15 = vmul.f32 1.442695, %v1404_v8 }
 0x2cb   : > { %v1419_v16 = vmul.f32 1.442695, %v1403_v11  ;;  %v1378_v18 = vpop.xlane.xlu1 %1377 }
 0x2cc   : > { %2622 = vpow2.f32 %v1421_v15  ;;  %v1406_v22 = vsub.f32 %v3142_v30, %v1378_v18 }
 0x2cd   : > { %2624 = vpow2.f32 %v1419_v16 }
 0x2ce   : > { %v1425_v23 = vmul.f32 1.442695, %v1406_v22 }
 0x2cf   : > { %v1376_v26 = vpop.xlane.xlu1 %1375 }
 0x2d0   : > { %v1405_v31 = vsub.f32 %v3145_v53, %v1376_v26  ;;  %2626 = vpow2.f32 %v1425_v23 }
 0x2d2   : > { %v1423_v34 = vmul.f32 1.442695, %v1405_v31 }
 0x2d3   : > { %v1382_v39 = vpop.xlane.xlu1 %1381 }
 0x2d4   : > { %2628 = vpow2.f32 %v1423_v34  ;;  %v1408_v46 = vsub.f32 %v3148_v5, %v1382_v39  ;;  %v1459_v34 = vpack.c.bf16 %v2897_v2, %v2897_v2 }
 0x2d6   : > { %v2623_v47 = vpop.eup %2622  ;;  %v1429_v58 = vmul.f32 1.442695, %v1408_v46  ;;  %v1505_v46 = vlaneseq }
 0x2d7   : > { %v2625_v51 = vpop.eup %2624  ;;  %v1380_v60 = vpop.xlane.xlu1 %1379 }
 0x2d8   : > { %v1407_v7 = vsub.f32 %v3151_v25, %v1380_v60  ;;  %v1451_v10 = vpack.c.bf16 %v2623_v47, %v2625_v51  ;;  %2630 = vpow2.f32 %v1429_v58  ;;  %v1506_v60 = vshrl.u32 %v1505_v46, 7 }
 0x2da   : > { %v1427_v19 = vmul.f32 1.442695, %v1407_v7  ;;  %2401 = vmatpush3.bf16.xpose.msra.mxu1 %v1451_v10  ;;  %v2627_v24 = vpop.eup %2626  ;;  %v1507_v7 = vsub.s32 3, %v1506_v60 }
 0x2db   : > { %v1386_v20 = vpop.xlane.xlu1 %1385  ;;  %2402 = vmatprep.subr.bf16.mxu1 %v2763_v1 }
 0x2dc   : > { %2632 = vpow2.f32 %v1427_v19  ;;  %v1410_v21 = vsub.f32 %v3154_v32, %v1386_v20 }
 0x2de   : > { %v2629_v28 = vpop.eup %2628  ;;  %v1433_v29 = vmul.f32 1.442695, %v1410_v21 }
 0x2df   : > { %v1384_v30 = vpop.xlane.xlu1 %1383  ;;  %v1452_v35 = vpack.c.bf16 %v2627_v24, %v2629_v28 }
 0x2e0   : > { %v1409_v40 = vsub.f32 %v3157_v36, %v1384_v30  ;;  %2634 = vpow2.f32 %v1433_v29 }
 0x2e2   : > { %v1431_v41 = vmul.f32 1.442695, %v1409_v40  ;;  %2403 = vmatpush3.bf16.xpose.msra.mxu1 %v1452_v35  ;;  %v2631_v53 = vpop.eup %2630 }
 0x2e3   : > { %v1390_v44 = vpop.xlane.xlu1 %1389  ;;  %2404 = vmatprep.subr.bf16.mxu1 %v2763_v1 }
 0x2e4   : > { %2636 = vpow2.f32 %v1431_v41  ;;  %v1412_v48 = vsub.f32 %v3160_v38, %v1390_v44 }
 0x2e6   : > { %v2633_v54 = vpop.eup %2632  ;;  %v1437_v55 = vmul.f32 1.442695, %v1412_v48 }
 0x2e7   : > { %v1388_v61 = vpop.xlane.xlu1 %1387  ;;  %v1453_v62 = vpack.c.bf16 %v2631_v53, %v2633_v54 }
 0x2e8   : > { %v1411_v3 = vsub.f32 %v3163_v43, %v1388_v61  ;;  %2638 = vpow2.f32 %v1437_v55 }
 0x2ea   : > { %v1435_v5 = vmul.f32 1.442695, %v1411_v3  ;;  %2405 = vmatpush3.bf16.xpose.msra.mxu1 %v1453_v62  ;;  %v2635_v13 = vpop.eup %2634 }
 0x2eb   : > { %v1394_v6 = vpop.xlane.xlu1 %1393  ;;  %2406 = vmatprep.subr.bf16.mxu1 %v2763_v1 }
 0x2ec   : > { %2640 = vpow2.f32 %v1435_v5  ;;  %v1414_v12 = vsub.f32 %v3166_v49, %v1394_v6 }
 0x2ee   : > { %v2637_v14 = vpop.eup %2636  ;;  %v1441_v17 = vmul.f32 1.442695, %v1414_v12 }
 0x2ef   : > { %v1392_v25 = vpop.xlane.xlu1 %1391  ;;  %v1454_v27 = vpack.c.bf16 %v2635_v13, %v2637_v14 }
 0x2f0   : > { %v1413_v32 = vsub.f32 %v3169_v52, %v1392_v25  ;;  %2642 = vpow2.f32 %v1441_v17 }
 0x2f2   : > { %v1439_v33 = vmul.f32 1.442695, %v1413_v32  ;;  %2407 = vmatpush3.bf16.xpose.msra.mxu1 %v1454_v27  ;;  %v2639_v38 = vpop.eup %2638 }
 0x2f3   : > { %v1398_v36 = vpop.xlane.xlu1 %1397  ;;  %2408 = vmatprep.subr.bf16.mxu1 %v2763_v1 }
 0x2f4   : > { %2644 = vpow2.f32 %v1439_v33  ;;  %v1416_v37 = vsub.f32 %v3172_v57, %v1398_v36  ;;  %v2662_v36 = vld [vmem:[%s2888_s24] sm:$0xff] }
 0x2f6   : > { %v2641_v42 = vpop.eup %2640  ;;  %v1445_v43 = vmul.f32 1.442695, %v1416_v37 }
 0x2f7   : > { %v1396_v45 = vpop.xlane.xlu1 %1395  ;;  %v1455_v49 = vpack.c.bf16 %v2639_v38, %v2641_v42 }
 0x2f8   : > { %v1415_v50 = vsub.f32 %v3175_v59, %v1396_v45  ;;  %2646 = vpow2.f32 %v1445_v43 }
 0x2fa   : > { %v1443_v56 = vmul.f32 1.442695, %v1415_v50  ;;  %2409 = vmatpush3.bf16.xpose.msra.mxu1 %v1455_v49  ;;  %v2643_v8 = vpop.eup %2642 }
 0x2fb   : > { %v1400_v52 = vpop.xlane.xlu1 %1399  ;;  %2410 = vmatprep.subr.bf16.mxu1 %v2763_v1 }
 0x2fc   : > { %2648 = vpow2.f32 %v1443_v56  ;;  %v1417_v4 = vsub.f32 %v3178_v63, %v1400_v52 }
 0x2fe   : > { %v2645_v9 = vpop.eup %2644  ;;  %v1447_v11 = vmul.f32 1.442695, %v1417_v4 }
 0x2ff   : > { %v1402_v57 = vpop.xlane.xlu1 %1401  ;;  %v1456_v15 = vpack.c.bf16 %v2643_v8, %v2645_v9 }
 0x300   : > { %v1418_v16 = vsub.f32 %v3181_v0, %v1402_v57  ;;  %2650 = vpow2.f32 %v1447_v11  ;;  %v1461_v0 = vrot.slane %v1459_v34, 2 }
 0x302   : > { %v1449_v18 = vmul.f32 1.442695, %v1418_v16  ;;  %2411 = vmatpush3.bf16.xpose.msra.mxu1 %v1456_v15  ;;  %v2647_v59 = vpop.eup %2646 }
 0x303   : > { %2412 = vmatprep.subr.bf16.mxu1 %v2763_v1 }
 0x304   : > { %2652 = vpow2.f32 %v1449_v18 }
 0x306   : > { %v2649_v22 = vpop.eup %2648 }
 0x307   : > { %v1457_v23 = vpack.c.bf16 %v2647_v59, %v2649_v22 }
 0x30a   : > { %2413 = vmatpush3.bf16.xpose.msra.mxu1 %v1457_v23  ;;  %v2651_v63 = vpop.eup %2650 }
 0x30b   : > { %2414 = vmatprep.subr.bf16.mxu1 %v2763_v1 }
 0x30e   : > { %v2653_v26 = vpop.eup %2652 }
 0x30f   : > { %v1458_v31 = vpack.c.bf16 %v2653_v26, %v2651_v63 }
 0x312   : > { %2415 = vmatpush3.bf16.xpose.msra.mxu1 %v1458_v31 }
 0x313   : > { %2420 = vmatprep.subr.mxu1 %v2763_v1 }
 0x319   : > { %2417 = vmatmul.mubr.bf16.vlgmr.msra.gmra.mrb[16].mxu1 %v1461_v0 }
 0x31a   : > { %2422 = vmatprep.mubr.msk.f32.mxu1 %vm2765_vm2, %v2763_v1 }
 0x3ec   : > { %v1497_v39 = vpop.f32.mrb[16].mxu1 }
 0x3ed   : > { %2654 = vrcp.f32 %v1497_v39  ;;  %v2418_v47 = vpop.f32.mrb[17].mxu1 }
 0x3ee   : > { %v1500_v51 = vpop.f32.mrb[18].mxu1 }
 0x3ef   : > { %v2419_v58 = vpop.f32.mrb[19].mxu1 }
 0x3f7   : > { %v2655_v10 = vpop.eup %2654 }
 0x3f8   : > { %v1508_v19 = vrot.slane %v2655_v10, %v1507_v7 }
 0x3fa   : > { %v3214_v20 = vmul.f32 %v1508_v19, %v1497_v39 }
 0x3fc   : > { %v1510_v21 = vsub.f32 %v2897_v2, %v3214_v20 }
 0x3fe   : > { %v1511_v24 = vmul.f32 %v1510_v21, %v1510_v21  ;;  %v1527_v28 = vadd.f32 1e-06, %v1510_v21 }
 0x400   : > { %v1513_v29 = vsel %vm1512_vm3, %v1511_v24, 0.0  ;;  %v1528_v30 = vmul.f32 %v1527_v28, %v1527_v28 }
 0x401   : > { %v1514_v35 = vrot.slane %v1513_v29, 4 }
 0x402   : > { %v1529_v40 = vsel %vm1512_vm3, %v1528_v30, 0.0 }
 0x403   : > { %v1515_v41 = vadd.f32 %v1514_v35, %v1513_v29  ;;  %v1530_v5 = vrot.slane %v1529_v40, 4 }
 0x405   : > { %v1516_v44 = vrot.slane %v1515_v41, 2  ;;  %v1531_v6 = vadd.f32 %v1530_v5, %v1529_v40 }
 0x407   : > { %v1517_v48 = vadd.f32 %v1516_v44, %v1515_v41  ;;  %v1532_v12 = vrot.slane %v1531_v6, 2 }
 0x409   : > { %v1518_v53 = vrot.slane %v1517_v48, 1  ;;  %v1533_v13 = vadd.f32 %v1532_v12, %v1531_v6 }
 0x40b   : > { %v1519_v54 = vadd.f32 %v1518_v53, %v1517_v48  ;;  %v1534_v14 = vrot.slane %v1533_v13, 1 }
 0x40d   : > { %2656 = vrsqrt.f32 %v1519_v54  ;;  %vm1522_vm4 = vcmp.eq.f32.partialorder %v1519_v54, inf  ;;  %v1525_v62 = vand.u32 2147483648, %v1519_v54  ;;  %vm1524_vm5 = vcmp.eq.f32.partialorder %v1519_v54, 0.0 }
 0x40e   : > { %v1535_v17 = vadd.f32 %v1534_v14, %v1533_v13 }
 0x410   : > { %2658 = vrsqrt.f32 %v1535_v17  ;;  %vm1538_vm7 = vcmp.eq.f32.partialorder %v1535_v17, inf  ;;  %v1541_v56 = vand.u32 2147483648, %v1535_v17  ;;  %vm1540_vm8 = vcmp.eq.f32.partialorder %v1535_v17, 0.0 }
 0x417   : > { %v2657_v55 = vpop.eup %2656 }
 0x418   : > { %v1521_v61 = vmul.f32 %v2657_v55, %v1519_v54 }
 0x41a   : > { %v1523_v3 = vsel %vm1522_vm4, %v1519_v54, %v1521_v61  ;;  %v2659_v38 = vpop.eup %2658 }
 0x41b   : > { %v1526_v2 = vsel %vm1524_vm5, %v1525_v62, %v1523_v3  ;;  %v1537_v45 = vmul.f32 %v2659_v38, %v1535_v17 }
 0x41c   : > { %1547 = vadd.xlane.f32.xlu1 %v1526_v2 }
 0x41d   : > { %v1539_v50 = vsel %vm1538_vm7, %v1535_v17, %v1537_v45 }
 0x41e   : > { %v1542_v52 = vsel %vm1540_vm8, %v1541_v56, %v1539_v50 }
 0x4a9   : > { %v1548_v25 = vpop.xlane.xlu1 %1547 }
 0x4aa   : > { %v1549_v27 = vmul.f32 0.0078125, %v1548_v25 }
 0x4ac   : > { %v1550_v32 = vadd.f32 1e-05, %v1549_v27 }
 0x4ae   : > { %vm1551_vm6 = vcmp.le.f32.partialorder %v1526_v2, %v1550_v32 }
 0x4af   : > { %v1552_v33 = vsel %vm1551_vm6, 1.0, %v2763_v1 }
 0x4b0   : > { %1553 = vadd.xlane.f32.xlu1 %v1552_v33  ;;  %v1562_v37 = vmul.f32 %v2662_v36, %v1552_v33  ;;  %v1557_v43 = vmul.f32 %v1552_v33, %v3214_v20 }
 0x4b2   : > { %v1563_v42 = vsel %vm140_vm0, %v1562_v37, 0.0  ;;  %v1558_v49 = vsel %vm140_vm0, %v1557_v43, 0.0 }
 0x4b4   : > { %1564 = vadd.xlane.f32.xlu1 %v1563_v42 }
 0x4b8   : > { %1559 = vadd.xlane.f32.xlu1 %v1558_v49 }
 0x4bc   : > { %1543 = vadd.xlane.f32.xlu1 %v1542_v52 }
 0x53d   : > { %v1554_v4 = vpop.xlane.xlu1 %1553 }
 0x53e   : > { %2660 = vrcp.f32 %v1554_v4 }
 0x541   : > { %v1565_v8 = vpop.xlane.xlu1 %1564 }
 0x545   : > { %v1560_v11 = vpop.xlane.xlu1 %1559 }
 0x548   : > { %v2661_v9 = vpop.eup %2660 }
 0x549   : > { %v1566_v57 = vmul.f32 %v2661_v9, %v1565_v8  ;;  %v1561_v15 = vmul.f32 %v2661_v9, %v1560_v11  ;;  %v1544_v58 = vpop.xlane.xlu1 %1543 }
 0x54a   : > { %v1546_v10 = vmul.f32 0.0078125, %v1544_v58 }
 0x54b   : > { %v1569_v16 = vsub.f32 %v2662_v36, %v1566_v57  ;;  %v1567_v18 = vsub.f32 %v3214_v20, %v1561_v15 }
 0x54d   : > { %v1570_v59 = vmul.f32 %v1569_v16, %v1552_v33  ;;  %v1568_v22 = vmul.f32 %v1567_v18, %v1552_v33 }
 0x54f   : > { %v1637_v23 = vand.u32 4294901760, %v1570_v59  ;;  %v1572_v63 = vand.u32 4294901760, %v1568_v22 }
 0x551   : > { %v1638_v26 = vsub.f32 %v1570_v59, %v1637_v23  ;;  %v1649_v31 = vsub.f32 %v1568_v22, %v1572_v63  ;;  %2421 = vmatpush3.xpose.msra.mxu1 %v1572_v63 }
 0x552   : > { %2425 = vmatprep.subr.mxu1 %v2763_v1 }
 0x553   : > { %v1639_v34 = vand.u32 4294901760, %v1638_v26  ;;  %v1650_v0 = vand.u32 4294901760, %v1649_v31 }
 0x555   : > { %v1640_v39 = vsub.f32 %v1638_v26, %v1639_v34  ;;  %v1651_v46 = vsub.f32 %v1649_v31, %v1650_v0 }
 0x557   : > { %v1641_v47 = vand.u32 4294901760, %v1640_v39  ;;  %v1652_v51 = vand.u32 4294901760, %v1651_v46 }
 0x559   : > { %2423 = vmatmul.mubr.f32.vlgmr.msra.gmra.mrb[20].mxu1 %v1641_v47 }
 0x55a   : > { %2426 = vmatpush3.xpose.msra.mxu1 %v1652_v51  ;;  %2427 = vmatprep.mubr.msk.f32.mxu1 %vm2765_vm2, %v2763_v1 }
 0x55b   : > { %2430 = vmatprep.subr.mxu1 %v2763_v1 }
 0x561   : > { %2428 = vmatmul.mubr.f32.vlgmr.msra.gmra.mrb[20].mxu1 %v1637_v23 }
 0x562   : > { %2431 = vmatpush3.xpose.msra.mxu1 %v1649_v31  ;;  %2432 = vmatprep.mubr.msk.f32.mxu1 %vm2765_vm2, %v2763_v1 }
 0x563   : > { %2435 = vmatprep.subr.mxu1 %v2763_v1 }
 0x569   : > { %2433 = vmatmul.mubr.f32.vlgmr.msra.gmra.mrb[20].mxu1 %v1638_v26 }
 0x56a   : > { %2436 = vmatpush3.xpose.msra.mxu1 %v1572_v63  ;;  %2437 = vmatprep.mubr.msk.f32.mxu1 %vm2765_vm2, %v2763_v1 }
 0x56b   : > { %2440 = vmatprep.subr.mxu1 %v2763_v1 }
 0x571   : > { %2438 = vmatmul.mubr.f32.vlgmr.msra.gmra.mrb[20].mxu1 %v1639_v34 }
 0x572   : > { %2441 = vmatpush3.xpose.msra.mxu1 %v1650_v0  ;;  %2442 = vmatprep.mubr.msk.f32.mxu1 %vm2765_vm2, %v2763_v1 }
 0x573   : > { %2445 = vmatprep.subr.mxu1 %v2763_v1 }
 0x579   : > { %2443 = vmatmul.mubr.f32.vlgmr.msra.gmra.mrb[20].mxu1 %v1637_v23 }
 0x57a   : > { %2446 = vmatpush3.xpose.msra.mxu1 %v1572_v63  ;;  %2447 = vmatprep.mubr.msk.f32.mxu1 %vm2765_vm2, %v2763_v1 }
 0x581   : > { %2448 = vmatmul.mubr.f32.vlgmr.msra.gmra.mrb[20].mxu1 %v1637_v23 }
 0x654   : > { %v2013_v60 = vpop.f32.mrb[20].mxu1 }
 0x655   : > { %2018 = vst.msk [vmem:[%s3225_s17] sm:$0x7] %vm2017_vm9, %v2013_v60  ;;  %v2449_v7 = vpop.f32.mrb[21].mxu1 }
 0x656   : > { %2020 = vst.msk [vmem:[%s3225_s17] sm:$0x7] %vm2019_vm10, %v1566_v57 }
 0x657   : > { %2022 = vst.msk [vmem:[%s3225_s17] sm:$0x7] %vm2021_vm11, %v1561_v15 }
 0x658   : > { %2024 = vst.msk [vmem:[%s3225_s17] sm:$0x1] %vm2023_vm12, %v1546_v10 }
 0x659   : > { %2706 = shalt.err (!%p2703_p4)
}
 0x65a   : > { %s2707_s5 = scalar_lea.hbm %s3252_s29, 128  ;;  %s2711_s14 = scalar_lea.hbm %s3299_s1, 256 }
 0x65b   : > { %p2708_p5 = scmp.ne.s32.totalorder %s3252_s29, %s2707_s5  ;;  %p2712_p0 = scmp.lt.u32.totalorder %s3252_s29, %s3299_s1 }
 0x65c   : > { %p2713_p1 = scmp.lt.u32.totalorder %s2711_s14, %s2707_s5  ;;  %p2715_p6 = scmp.lt.u32.totalorder %s2707_s5, %s3252_s29 }
 0x65d   : > { %p2709_p8 = pnand %p2708_p5, %p3308_p11 }
 0x65e   : > { %p2714_p3 = por %p2713_p1, %p2712_p0 }
 0x65f   : > { %p2710_p9 = pneg %p2709_p8 }
 0x660   : > { %p2716_p12 = por %p2715_p6, %p2714_p3 }
 0x662   : > { %p2717_p13 = pnand %p2716_p12, %p2710_p9 }
 0x664   : > { %2720 = shalt.err (!%p2717_p13)
}
 0x665   : > { %2542 = dma.vmem_to_hbm [thread:$0]  (%p3308_p11), %s3254_s26, 128, %s3252_s29, %s2026_s10  }
 0x666 PF: > { %s2051_s21 = sand.u32 1, %s2747_s6   ;;  %p3309_p7 = scmp.ne.s32.totalorder %s3304_s19, 0 }
 0x667   : > { %p3310_p10 = scmp.ge.s32.totalorder %s2759_s9, 2  ;;  %s2052_s22 = scalar_lea.sflag [#allocation6], %s2051_s21 }
 0x669   : > { %p2549_p2 = pnand %p3310_p10, %p3309_p7 }
 0x66b   : > { %2742 = dma.done.wait (!%p2549_p2), %s2052_s22, 128  }
 0x66c   : > { %2744 = vsyncadd (!%p2549_p2), %s2052_s22, 4294967168  ;;  %p14_p4 = scmp.ge.s32.totalorder %s2802_s12, 4   ;;  %s3311_s6 = smov %s2751_s7 }
 0x66d   : > { %s3312_s7 = smov %s2755_s8  ;;  %s3313_s8 = smov %s2814_s15 }
 0x66e   : > { %s3314_s9 = smov %s2802_s12  ;;  %16 = sbr.rel (!%p14_p4) target bundleno = 5 (0x5), region = 69 }
 0x675   :  { %2057 = vsyncpa [#allocation5], 1 }
 0x676   :  { %2059 = vsyncpa [#allocation5 + $0x1], 1 }
 0x677   :  { %2060 = vsyncpa [#allocation6], 1 }
 0x678   :  { %2062 = vsyncpa [#allocation6 + $0x1], 1 }

</bundles_post_ra>
